<compile_context>
chip_gen: v5e
topology: v5e:2x2
jax: 0.10.0
libtpu: 0.0.40
codegen_flags: <defaults>
</compile_context>

<pallas_src>
import functools

import jax
import jax.numpy as jnp
from jax.experimental import pallas as pl
from jax.experimental.pallas import tpu as pltpu


INPUT_SIZE = 2
HIDDEN_SIZE = 64
OUTPUT_SIZE = 1


def _mlp_kernel(xt_ref, w1_ref, b1_ref, w2_ref, b2_ref, w3_ref, b3_ref, o_ref):
    # xt_ref : (INPUT_SIZE, block_m)   -- batch on the lane axis
    # w1_ref : (HIDDEN, INPUT_SIZE)    -- torch layout (out, in)
    # b1_ref : (HIDDEN, 1)
    # w2_ref : (HIDDEN, HIDDEN)
    # b2_ref : (HIDDEN, 1)
    # w3_ref : (OUTPUT, HIDDEN)
    # b3_ref : (OUTPUT, 1)
    # o_ref  : (OUTPUT, block_m)       -- lane-dense output store

    xt = xt_ref[...]
    w1 = w1_ref[...]

    # Layer 1: K=INPUT_SIZE(=2) contraction done as a rank-k VPU update.
    # (HIDDEN, 1) * (1, block_m) broadcast-multiplies; no MXU push for K=2.
    h = b1_ref[...]                      # (HIDDEN, 1), broadcasts over lanes
    for k in range(INPUT_SIZE):          # static unroll (INPUT_SIZE is tiny)
        h = h + w1[:, k:k + 1] * xt[k:k + 1, :]
    h = jnp.maximum(h, 0.0)              # (HIDDEN, block_m)

    # Layer 2: (HIDDEN, HIDDEN) @ (HIDDEN, block_m) on the MXU, f32 accumulate.
    h = jnp.dot(w2_ref[...], h, preferred_element_type=jnp.float32)
    h = jnp.maximum(h + b2_ref[...], 0.0)

    # Layer 3: (OUTPUT, HIDDEN) @ (HIDDEN, block_m) -> lane-dense (1, block_m).
    o = jnp.dot(w3_ref[...], h, preferred_element_type=jnp.float32)
    o_ref[...] = o + b3_ref[...]


@functools.partial(jax.jit, static_argnames=("block_m",))
def fractal_compressor_forward(x, params, block_m=512):
    """x: (B, INPUT_SIZE) float32.  params: torch-layout weights/biases."""
    B, in_f = x.shape
    assert in_f == INPUT_SIZE

    w1, b1 = params["w1"], params["b1"]   # (H, IN), (H, 1)
    w2, b2 = params["w2"], params["b2"]   # (H, H),  (H, 1)
    w3, b3 = params["w3"], params["b3"]   # (O, H),  (O, 1)

    num_tiles = pl.cdiv(B, block_m)
    Bp = num_tiles * block_m

    # Transpose so batch is the lane (last) dim; pad batch to a tile multiple.
    xt = x.T                                       # (IN, B)
    if Bp != B:
        xt = jnp.pad(xt, ((0, 0), (0, Bp - B)))    # (IN, Bp)

    full = lambda arr: pl.BlockSpec(arr.shape, lambda i: (0, 0))

    flops = 2 * Bp * (INPUT_SIZE * HIDDEN_SIZE
                      + HIDDEN_SIZE * HIDDEN_SIZE
                      + HIDDEN_SIZE * OUTPUT_SIZE)
    param_bytes = 4 * (w1.size + b1.size + w2.size + b2.size + w3.size + b3.size)
    bytes_accessed = 4 * Bp * (INPUT_SIZE + OUTPUT_SIZE) + param_bytes

    out_t = pl.pallas_call(
        _mlp_kernel,
        out_shape=jax.ShapeDtypeStruct((OUTPUT_SIZE, Bp), jnp.float32),
        grid_spec=pltpu.PrefetchScalarGridSpec(
            num_scalar_prefetch=0,
            grid=(num_tiles,),
            in_specs=[
                pl.BlockSpec((INPUT_SIZE, block_m), lambda i: (0, i)),
                full(w1), full(b1),
                full(w2), full(b2),
                full(w3), full(b3),
            ],
            out_specs=pl.BlockSpec((OUTPUT_SIZE, block_m), lambda i: (0, i)),
        ),
        compiler_params=pltpu.CompilerParams(
            dimension_semantics=("parallel",),
        ),
        cost_estimate=pl.CostEstimate(
            flops=int(flops),
            transcendentals=0,
            bytes_accessed=int(bytes_accessed),
        ),
    )(xt, w1, b1, w2, b2, w3, b3)

    # Slice off padding and return in the PyTorch (B, OUTPUT_SIZE) layout.
    return out_t[:, :B].T


def init_params(key):
    """Deterministic synthetic parameters in torch layout: W is (out, in)."""
    ks = jax.random.split(key, 6)

    def lin(kw, kb, fan_in, fan_out):
        bound = 1.0 / jnp.sqrt(fan_in)
        w = jax.random.uniform(kw, (fan_out, fan_in), jnp.float32, -bound, bound)
        b = jax.random.uniform(kb, (fan_out, 1), jnp.float32, -bound, bound)
        return w, b

    w1, b1 = lin(ks[0], ks[1], INPUT_SIZE, HIDDEN_SIZE)
    w2, b2 = lin(ks[2], ks[3], HIDDEN_SIZE, HIDDEN_SIZE)
    w3, b3 = lin(ks[4], ks[5], HIDDEN_SIZE, OUTPUT_SIZE)
    return {"w1": w1, "b1": b1, "w2": w2, "b2": b2, "w3": w3, "b3": b3}


def reference_forward(x, p):
    h = jnp.maximum(x @ p["w1"].T + p["b1"].T, 0.0)
    h = jnp.maximum(h @ p["w2"].T + p["b2"].T, 0.0)
    return h @ p["w3"].T + p["b3"].T


if __name__ == "__main__":
    key = jax.random.PRNGKey(0)
    k_params, k_x1, k_x2 = jax.random.split(key, 3)

    params = init_params(k_params)

    # Case 1: batch = 1024 -> grid of 2 parallel steps (keeps both v7x TCs busy).
    x1 = jax.random.normal(k_x1, (1024, INPUT_SIZE), jnp.float32)
    out1 = jax.block_until_ready(fractal_compressor_forward(x1, params))
    ref1 = reference_forward(x1, params)
    assert out1.shape == (1024, OUTPUT_SIZE)
    assert jnp.allclose(out1, ref1, atol=1e-5, rtol=1e-5), "mismatch (case 1)"

    # Case 2: ragged batch = 300 -> exercises the pad-and-slice path.
    x2 = jax.random.normal(k_x2, (300, INPUT_SIZE), jnp.float32)
    out2 = jax.block_until_ready(fractal_compressor_forward(x2, params))
    ref2 = reference_forward(x2, params)
    assert out2.shape == (300, OUTPUT_SIZE)
    assert jnp.allclose(out2, ref2, atol=1e-5, rtol=1e-5), "mismatch (case 2)"

    print("KERNEL_OK")
</pallas_src>

<mosaic_0001>
module attributes {stable_mosaic.version = 11 : i64} {
  func.func @_mlp_kernel(%arg0: i32, %arg1: memref<2x512xf32, #tpu.memory_space<vmem>>, %arg2: memref<64x2xf32, #tpu.memory_space<vmem>>, %arg3: memref<64x1xf32, #tpu.memory_space<vmem>>, %arg4: memref<64x64xf32, #tpu.memory_space<vmem>>, %arg5: memref<64x1xf32, #tpu.memory_space<vmem>>, %arg6: memref<1x64xf32, #tpu.memory_space<vmem>>, %arg7: memref<1x1xf32, #tpu.memory_space<vmem>>, %arg8: memref<1x512xf32, #tpu.memory_space<vmem>>) attributes {dimension_semantics = [#tpu.dimension_semantics<parallel>], iteration_bounds = array<i64: 2>, scalar_prefetch = 0 : i64, scratch_operands = 0 : i64, tpu.core_type = #tpu.core_type<tc>, window_params = [{transform_indices = @transform_0, window_bounds = array<i64: 2, 512>}, {pipeline_mode = #tpu.pipeline_mode<synchronous>, transform_indices = @transform_1, window_bounds = array<i64: 64, 2>}, {pipeline_mode = #tpu.pipeline_mode<synchronous>, transform_indices = @transform_2, window_bounds = array<i64: 64, 1>}, {pipeline_mode = #tpu.pipeline_mode<synchronous>, transform_indices = @transform_3, window_bounds = array<i64: 64, 64>}, {pipeline_mode = #tpu.pipeline_mode<synchronous>, transform_indices = @transform_4, window_bounds = array<i64: 64, 1>}, {pipeline_mode = #tpu.pipeline_mode<synchronous>, transform_indices = @transform_5, window_bounds = array<i64: 1, 64>}, {pipeline_mode = #tpu.pipeline_mode<synchronous>, transform_indices = @transform_6, window_bounds = array<i64: 1, 1>}, {transform_indices = @transform_7, window_bounds = array<i64: 1, 512>}]} {
    %c0 = arith.constant 0 : index
    %c0_0 = arith.constant 0 : index
    %0 = vector.load %arg1[%c0, %c0_0] : memref<2x512xf32, #tpu.memory_space<vmem>>, vector<2x512xf32>
    %c0_1 = arith.constant 0 : index
    %c0_2 = arith.constant 0 : index
    %1 = vector.load %arg2[%c0_1, %c0_2] : memref<64x2xf32, #tpu.memory_space<vmem>>, vector<64x2xf32>
    %c0_3 = arith.constant 0 : index
    %c0_4 = arith.constant 0 : index
    %2 = vector.load %arg3[%c0_3, %c0_4] : memref<64x1xf32, #tpu.memory_space<vmem>>, vector<64x1xf32>
    %3 = vector.extract_strided_slice %1 {offsets = [0, 0], sizes = [64, 1], strides = [1, 1]} : vector<64x2xf32> to vector<64x1xf32>
    %4 = vector.extract_strided_slice %0 {offsets = [0, 0], sizes = [1, 512], strides = [1, 1]} : vector<2x512xf32> to vector<1x512xf32>
    %5 = vector.broadcast %3 : vector<64x1xf32> to vector<64x512xf32>
    %6 = vector.broadcast %4 : vector<1x512xf32> to vector<64x512xf32>
    %7 = arith.mulf %5, %6 : vector<64x512xf32>
    %8 = vector.broadcast %2 : vector<64x1xf32> to vector<64x512xf32>
    %9 = arith.addf %8, %7 : vector<64x512xf32>
    %10 = vector.extract_strided_slice %1 {offsets = [0, 1], sizes = [64, 1], strides = [1, 1]} : vector<64x2xf32> to vector<64x1xf32>
    %11 = vector.extract_strided_slice %0 {offsets = [1, 0], sizes = [1, 512], strides = [1, 1]} : vector<2x512xf32> to vector<1x512xf32>
    %12 = vector.broadcast %10 : vector<64x1xf32> to vector<64x512xf32>
    %13 = vector.broadcast %11 : vector<1x512xf32> to vector<64x512xf32>
    %14 = arith.mulf %12, %13 : vector<64x512xf32>
    %15 = arith.addf %9, %14 : vector<64x512xf32>
    %cst = arith.constant 0.000000e+00 : f32
    %16 = vector.broadcast %cst : f32 to vector<64x512xf32>
    %17 = arith.maximumf %15, %16 : vector<64x512xf32>
    %c0_5 = arith.constant 0 : index
    %c0_6 = arith.constant 0 : index
    %18 = vector.load %arg4[%c0_5, %c0_6] : memref<64x64xf32, #tpu.memory_space<vmem>>, vector<64x64xf32>
    %cst_7 = arith.constant dense<0.000000e+00> : vector<64x512xf32>
    %19 = tpu.matmul %18, %17, %cst_7 {dimension_numbers = #tpu.dot_dimension_numbers<[1], [0], [0], [1], [0, 0, 1, 1], [], []>} : vector<64x64xf32>, vector<64x512xf32>, vector<64x512xf32> -> vector<64x512xf32>
    %c0_8 = arith.constant 0 : index
    %c0_9 = arith.constant 0 : index
    %20 = vector.load %arg5[%c0_8, %c0_9] : memref<64x1xf32, #tpu.memory_space<vmem>>, vector<64x1xf32>
    %21 = vector.broadcast %20 : vector<64x1xf32> to vector<64x512xf32>
    %22 = arith.addf %19, %21 : vector<64x512xf32>
    %cst_10 = arith.constant 0.000000e+00 : f32
    %23 = vector.broadcast %cst_10 : f32 to vector<64x512xf32>
    %24 = arith.maximumf %22, %23 : vector<64x512xf32>
    %c0_11 = arith.constant 0 : index
    %c0_12 = arith.constant 0 : index
    %25 = vector.load %arg6[%c0_11, %c0_12] : memref<1x64xf32, #tpu.memory_space<vmem>>, vector<1x64xf32>
    %cst_13 = arith.constant dense<0.000000e+00> : vector<1x512xf32>
    %26 = tpu.matmul %25, %24, %cst_13 {dimension_numbers = #tpu.dot_dimension_numbers<[1], [0], [0], [1], [0, 0, 1, 1], [], []>} : vector<1x64xf32>, vector<64x512xf32>, vector<1x512xf32> -> vector<1x512xf32>
    %c0_14 = arith.constant 0 : index
    %c0_15 = arith.constant 0 : index
    %27 = vector.load %arg7[%c0_14, %c0_15] : memref<1x1xf32, #tpu.memory_space<vmem>>, vector<1x1xf32>
    %28 = vector.broadcast %27 : vector<1x1xf32> to vector<1x512xf32>
    %29 = arith.addf %26, %28 : vector<1x512xf32>
    %c0_16 = arith.constant 0 : index
    %c0_17 = arith.constant 0 : index
    %30 = vector.load %arg8[%c0_16, %c0_17] : memref<1x512xf32, #tpu.memory_space<vmem>>, vector<1x512xf32>
    tpu.vector_store %arg8[%c0_16, %c0_17], %29 {strides = array<i32>} : memref<1x512xf32, #tpu.memory_space<vmem>>, vector<1x512xf32>,
    return
  }
  func.func @transform_0(%arg0: i32) -> (i32, i32) {
    %c0_i32 = arith.constant 0 : i32
    %c0_i32_0 = arith.constant 0 : i32
    return %c0_i32, %arg0 : i32, i32
  }
  func.func @transform_1(%arg0: i32) -> (i32, i32) {
    %c0_i32 = arith.constant 0 : i32
    %c0_i32_0 = arith.constant 0 : i32
    %c0_i32_1 = arith.constant 0 : i32
    return %c0_i32, %c0_i32_0 : i32, i32
  }
  func.func @transform_2(%arg0: i32) -> (i32, i32) {
    %c0_i32 = arith.constant 0 : i32
    %c0_i32_0 = arith.constant 0 : i32
    %c0_i32_1 = arith.constant 0 : i32
    return %c0_i32, %c0_i32_0 : i32, i32
  }
  func.func @transform_3(%arg0: i32) -> (i32, i32) {
    %c0_i32 = arith.constant 0 : i32
    %c0_i32_0 = arith.constant 0 : i32
    %c0_i32_1 = arith.constant 0 : i32
    return %c0_i32, %c0_i32_0 : i32, i32
  }
  func.func @transform_4(%arg0: i32) -> (i32, i32) {
    %c0_i32 = arith.constant 0 : i32
    %c0_i32_0 = arith.constant 0 : i32
    %c0_i32_1 = arith.constant 0 : i32
    return %c0_i32, %c0_i32_0 : i32, i32
  }
  func.func @transform_5(%arg0: i32) -> (i32, i32) {
    %c0_i32 = arith.constant 0 : i32
    %c0_i32_0 = arith.constant 0 : i32
    %c0_i32_1 = arith.constant 0 : i32
    return %c0_i32, %c0_i32_0 : i32, i32
  }
  func.func @transform_6(%arg0: i32) -> (i32, i32) {
    %c0_i32 = arith.constant 0 : i32
    %c0_i32_0 = arith.constant 0 : i32
    %c0_i32_1 = arith.constant 0 : i32
    return %c0_i32, %c0_i32_0 : i32, i32
  }
  func.func @transform_7(%arg0: i32) -> (i32, i32) {
    %c0_i32 = arith.constant 0 : i32
    %c0_i32_0 = arith.constant 0 : i32
    return %c0_i32, %arg0 : i32, i32
  }
}

</mosaic_0001>

<bundles_post_ra>
// kernel: fractal_compressor_forward.1
= control target key start
LH: loop header
LB: loop body
LE: loop exit
PB: predicated region body
PF: predicated region fallthrough
CT: control target
= control target key end

     0   :  { %s1630_s0 = inlined_call_operand.vmem [shape: f32[2,1024], index: 0, kind: input, shape index: {}]   ;;  %s1631_s1 = inlined_call_operand.vmem [shape: f32[64,2], index: 1, kind: input, shape index: {}]   ;;  %s1632_s2 = inlined_call_operand.vmem [shape: f32[64,1], index: 2, kind: input, shape index: {}]   ;;  %s1633_s3 = inlined_call_operand.vmem [shape: f32[64,64], index: 3, kind: input, shape index: {}]   ;;  %s1634_s4 = inlined_call_operand.vmem [shape: f32[64,1], index: 4, kind: input, shape index: {}]   ;;  %s1635_s5 = inlined_call_operand.vmem [shape: f32[1,64], index: 5, kind: input, shape index: {}]   ;;  %s1636_s6 = inlined_call_operand.<no memory space> [shape: f32[1,1], index: 6, kind: input, shape index: {}]   ;;  %s1637_s7 = inlined_call_operand.hbm [shape: f32[1,1024], index: 7, kind: output, shape index: {}]  }
   0x1   :  { %v12_v0 = vstv %s1636_s6 }
   0x2   :  { %13 = vst [vmem:[#allocation2] sm:$0x1] %v12_v0 }
   0x3   :  { %14 = vsyncpa [#allocation4], 0 }
   0x4   :  { %16 = vsyncpa [#allocation4 + $0x1], 0  ;;  %s1267_s26 = smov 0   ;;  %s1269_s27 = smov 0  }
   0x5   :  { %s1271_s28 = smov 0   ;;  %s1273_s29 = smov 0  }
   0x6 LB: > { %s1057_s6 = sadd.s32 4294967295, %s1220_s29   ;;  %s1058_s30 = sadd.s32 4294967294, %s1220_s29   ;;  %s1220_s29 = sphi %s1273_s29, %s1643_s29   ;;  %s1216_s28 = sphi %s1271_s28, %s1642_s28   ;;  %s1212_s27 = sphi %s1269_s27, %s1641_s27   ;;  %s1208_s26 = sphi %s1267_s26, %s1640_s26  }
   0x7   : > { %s1290_s8 = sadd.s32 1, %s1220_s29   ;;  %s181_s9 = sadd.s32 1, %s1216_s28 }
   0x8   : > { %s178_s10 = ssub.s32 %s1220_s29, %s1290_s8  ;;  %p191_p0 = scmp.ne.s32.totalorder %s1216_s28, %s1212_s27 }
   0x9   : > { %p179_p1 = scmp.eq.s32.totalorder %s178_s10, 0  ;;  %p192_p2 = scmp.eq.s32.totalorder %s1057_s6, 1 }
   0xa   : > { %p197_p3 = scmp.ne.s32.totalorder %s1212_s27, %s1208_s26  ;;  %p198_p4 = scmp.eq.s32.totalorder %s1058_s30, 1 }
   0xb   : > { %s1302_s11 = scalar_select %p179_p1, %s1216_s28, %s181_s9  }
   0xc   : > { %p1304_p5 = por %p192_p2, %p191_p0  ;;  %p1308_p6 = por %p198_p4, %p197_p3 }
   0xd   : > { %p1061_p7 = scmp.ge.s32.totalorder %s1220_s29, 1  ;;  %p243_p8 = scmp.lt.s32.totalorder %s1220_s29, 3 }
   0xf   : > { %p244_p9 = pnand %p1061_p7, %p243_p8 }
  0x10   : > { %s1373_s22 = sshll.u32 (!%p244_p9), %s1057_s6, 2  ;;  %s272_s30 = sand.u32 (!%p244_p9), 1, %s1212_s27  }
  0x11   : > { %247 = sbr.rel (%p244_p9) target bundleno = 565 (0x235), region = 48  ;;  %p276_p10 = scmp.lt.s32.totalorder (!%p244_p9), %s1373_s22, 7 }
  0x12   : > { %s994_s14 = scalar_lea.hbm (!%p244_p9), %s1637_s7, %s1373_s22 }
  0x13   : > { %s998_s17 = sshll.u32 (!%p244_p9), %s994_s14, 4  ;;  %s999_s17 = int_to_ptr.hbm [resolvable:$true] %s998_s17 }
  0x14   : > { %s1172_s18 = sshra.s32 (!%p244_p9), %s999_s17, 4  ;;  %s1173_s18 = int_to_ptr.hbm [resolvable:$true] %s1172_s18 }
  0x15   : > { %s1174_s19 = scalar_lea.hbm (!%p244_p9), %s1173_s18, 4  ;;  %p1179_p0 = scmp.lt.s32.totalorder (!%p244_p9), %s1173_s18, %s1637_s7 }
  0x16   : > { %v298_v1 = vld [vmem:[%s1632_s2 + $0x38] sm:$0xff]  ;;  %v289_v2 = vld [vmem:[%s1631_s1 + $0x30] sm:$0xff]  ;;  %v1222_v3 = vmov 1   ;;  %v1223_v4 = vmov 0   ;;  %v288_v5 = vld [vmem:[%s1631_s1 + $0x28] sm:$0xff]  ;;  %s277_s23 = scalar_select %p276_p10, %s1373_s22, 7 }
  0x17   : > { %1149 = vset.pattern.permute.xlu0 %v1222_v3  ;;  %1146 = vset.pattern.permute.xlu1 %v1223_v4  ;;  %v290_v6 = vld [vmem:[%s1631_s1 + $0x38] sm:$0xff]  ;;  %v297_v7 = vld [vmem:[%s1632_s2 + $0x30] sm:$0xff]  ;;  %v296_v8 = vld [vmem:[%s1632_s2 + $0x28] sm:$0xff]  ;;  %vm652_vm0 = vcmask 523264   ;;  %vm971_vm1 = vcmask 1040384   ;;  %vm973_vm2 = vcmask 1042434   ;;  %p1175_p11 = scmp.ne.s32.totalorder %s1173_s18, %s1174_s19 }
  0x18   : > { %421 = vperm.xlu1 %1146, %v298_v1   ;;  %481 = vperm.xlu0 %1149, %v289_v2   ;;  %v287_v9 = vld [vmem:[%s1631_s1 + $0x20] sm:$0xff]  ;;  %v286_v11 = vld [vmem:[%s1631_s1 + $0x18] sm:$0xff]  ;;  %v284_v12 = vld [vmem:[%s1631_s1 + $0x8] sm:$0xff]  ;;  %s1064_s24 = sshll.u32 %s277_s23, 1  ;;  %vm975_vm3 = vcmask 1041408   ;;  %s984_s22 = scalar_lea.sflag [#allocation4], %s272_s30 }
  0x19   : > { %1148 = vset.pattern.permute.xlu2 %v1223_v4  ;;  %v295_v10 = vld [vmem:[%s1632_s2 + $0x20] sm:$0xff]  ;;  %v285_v13 = vld [vmem:[%s1631_s1 + $0x10] sm:$0xff]  ;;  %v294_v15 = vld [vmem:[%s1632_s2 + $0x18] sm:$0xff]  ;;  %s279_s9 = scalar_lea.vmem %s1630_s0, %s1064_s24  ;;  %p1176_p12 = pnand %p1175_p11, %p1304_p5 }
  0x1a   : > { %326 = vperm.xlu2 %1148, %v288_v5   ;;  %v283_v14 = vld [vmem:[%s1631_s1] sm:$0xff]  ;;  %v293_v17 = vld [vmem:[%s1632_s2 + $0x10] sm:$0xff]  ;;  %v292_v19 = vld [vmem:[%s1632_s2 + $0x8] sm:$0xff]  ;;  %s1178_s23 = scalar_lea.hbm %s1637_s7, 8 }
  0x1b   : > { %v291_v16 = vld [vmem:[%s1632_s2] sm:$0xff]  ;;  %v610_v18 = vld [vmem:[%s1634_s4 + $0x30] sm:$0xff]  ;;  %v607_v20 = vld [vmem:[%s1634_s4 + $0x18] sm:$0xff]  ;;  %p1177_p13 = pneg %p1176_p12  ;;  %p1180_p1 = scmp.lt.s32.totalorder %s1178_s23, %s1174_s19 }
  0x1c   : > { %v604_v21 = vld [vmem:[%s1634_s4] sm:$0xff] }
  0x1d   : > { %v282_v24 = vld [vmem:[%s279_s9] sm:$0xff]  ;;  %s1062_s9 = sshll.u32 %s272_s30, 2  ;;  %p1181_p2 = por %p1180_p1, %p1179_p0 }
  0x1e   : > { %v340_v27 = vperm.slane %v282_v24, 0  ;;  %v341_v28 = vperm.slane %v282_v24, 2  ;;  %v488_v29 = vperm.slane %v282_v24, 1  ;;  %v342_v30 = vperm.slane %v282_v24, 4  ;;  %s274_s15 = scalar_lea.vmem [#allocation3], %s1062_s9 }
  0x1f   : > { %v489_v31 = vperm.slane %v282_v24, 3  ;;  %v343_v32 = vperm.slane %v282_v24, 6  ;;  %v490_v35 = vperm.slane %v282_v24, 5  ;;  %v491_v37 = vperm.slane %v282_v24, 7  ;;  %s996_s16 = sshll.u32 %s274_s15, 4  ;;  %p1182_p3 = pnand %p1181_p2, %p1177_p13  ;;  %s997_s16 = int_to_ptr.vmem [resolvable:$true] %s996_s16 }
  0x20   : > { %1147 = vset.pattern.permute.xlu1 %v1222_v3  ;;  %1150 = vset.pattern.permute.xlu0 %v1223_v4  ;;  %v1382_v33 = vperm.slane %v340_v27, 0  ;;  %v1384_v34 = vperm.slane %v341_v28, 0  ;;  %v1386_v36 = vperm.slane %v488_v29, 1  ;;  %v1388_v38 = vperm.slane %v342_v30, 0 }
  0x21   : > { %485 = vperm.xlu1 %1147, %v290_v6   ;;  %336 = vperm.xlu0 %1150, %v290_v6   ;;  %v1392_v40 = vperm.slane %v489_v31, 1  ;;  %v1394_v41 = vperm.slane %v343_v32, 0  ;;  %v1398_v46 = vperm.slane %v490_v35, 1  ;;  %v1401_v48 = vperm.slane %v491_v37, 1 }
  0x22   : > { %416 = vperm.xlu2 %1148, %v297_v7  }
  0x29   : > { %1151 = vset.pattern.permute.xlu1 %v1223_v4  ;;  %331 = vperm.xlu0 %1150, %v289_v2  }
  0x2a   : > { %411 = vperm.xlu2 %1148, %v296_v8   ;;  %321 = vperm.xlu1 %1151, %v287_v9  }
  0x31   : > { %406 = vperm.xlu0 %1150, %v295_v10  }
  0x32   : > { %1152 = vset.pattern.permute.xlu1 %v1222_v3  ;;  %316 = vperm.xlu2 %1148, %v286_v11  }
  0x33   : > { %477 = vperm.xlu1 %1152, %v288_v5  }
  0x39   : > { %306 = vperm.xlu0 %1150, %v284_v12  }
  0x3a   : > { %311 = vperm.xlu2 %1148, %v285_v13  }
  0x3b   : > { %473 = vperm.xlu1 %1152, %v287_v9  }
  0x41   : > { %301 = vperm.xlu0 %1150, %v283_v14  }
  0x42   : > { %1154 = vset.pattern.permute.xlu2 %v1222_v3 }
  0x43   : > { %1153 = vset.pattern.permute.xlu1 %v1223_v4  ;;  %469 = vperm.xlu2 %1154, %v286_v11  }
  0x44   : > { %401 = vperm.xlu1 %1153, %v294_v15  }
  0x49   : > { %386 = vperm.xlu0 %1150, %v291_v16  }
  0x4b   : > { %465 = vperm.xlu2 %1154, %v285_v13  }
  0x4c   : > { %396 = vperm.xlu1 %1153, %v293_v17  }
  0x51   : > { %644 = vperm.xlu0 %1150, %v610_v18  }
  0x53   : > { %461 = vperm.xlu2 %1154, %v284_v12  }
  0x54   : > { %391 = vperm.xlu1 %1153, %v292_v19  }
  0x59   : > { %629 = vperm.xlu0 %1150, %v607_v20  }
  0x5b   : > { %1156 = vset.pattern.permute.xlu2 %v1223_v4 }
  0x5c   : > { %1155 = vset.pattern.permute.xlu1 %v1222_v3 }
  0x5d   : > { %457 = vperm.xlu1 %1155, %v283_v14  }
  0x61   : > { %614 = vperm.xlu0 %1150, %v604_v21  }
  0x65   : > { %1157 = vset.pattern.permute.xlu1 %v1223_v4 }
  0x74   : > { %v1376_v22 = vpop.permute.xlu2 %326 }
  0x75   : > { %v372_v15 = vmul.f32 %v1382_v33, %v1376_v22  ;;  %v373_v18 = vmul.f32 %v1384_v34, %v1376_v22  ;;  %v374_v21 = vmul.f32 %v1388_v38, %v1376_v22  ;;  %v375_v24 = vmul.f32 %v1394_v41, %v1376_v22 }
  0x7c   : > { %v417_v23 = vpop.permute.xlu2 %416 }
  0x84   : > { %v1390_v39 = vpop.permute.xlu2 %411 }
  0x85   : > { %v445_v32 = vadd.f32 %v1390_v39, %v373_v18  ;;  %v446_v35 = vadd.f32 %v1390_v39, %v374_v21  ;;  %v447_v37 = vadd.f32 %v1390_v39, %v375_v24 }
  0x8a   : > { %v422_v25 = vpop.permute.xlu1 %421  ;;  %v482_v26 = vpop.permute.xlu0 %481 }
  0x8b   : > { %v524_v1 = vmul.f32 %v1386_v36, %v482_v26  ;;  %v525_v2 = vmul.f32 %v1392_v40, %v482_v26  ;;  %v526_v9 = vmul.f32 %v1398_v46, %v482_v26  ;;  %v527_v10 = vmul.f32 %v1401_v48, %v482_v26 }
  0x8c   : > { %v1410_v3 = vpop.permute.xlu2 %316 }
  0x8d   : > { %v367_v18 = vmul.f32 %v1394_v41, %v1410_v3 }
  0x93   : > { %v486_v42 = vpop.permute.xlu1 %485  ;;  %v337_v43 = vpop.permute.xlu0 %336 }
  0x94   : > { %v380_v44 = vmul.f32 %v1382_v33, %v337_v43  ;;  %v381_v45 = vmul.f32 %v1384_v34, %v337_v43  ;;  %v528_v47 = vmul.f32 %v1386_v36, %v486_v42  ;;  %v529_v51 = vmul.f32 %v1392_v40, %v486_v42  ;;  %v1430_v22 = vpop.permute.xlu2 %311 }
  0x95   : > { %v382_v52 = vmul.f32 %v1388_v38, %v337_v43  ;;  %v383_v53 = vmul.f32 %v1394_v41, %v337_v43  ;;  %v530_v57 = vmul.f32 %v1398_v46, %v486_v42  ;;  %v531_v59 = vmul.f32 %v1401_v48, %v486_v42 }
  0x96   : > { %v452_v49 = vadd.f32 %v422_v25, %v380_v44  ;;  %v453_v50 = vadd.f32 %v422_v25, %v381_v45 }
  0x97   : > { %v454_v56 = vadd.f32 %v422_v25, %v382_v52  ;;  %v455_v58 = vadd.f32 %v422_v25, %v383_v53 }
  0x98   : > { %v560_v54 = vadd.f32 %v528_v47, %v452_v49  ;;  %v561_v55 = vadd.f32 %v529_v51, %v453_v50 }
  0x99   : > { %v562_v62 = vadd.f32 %v530_v57, %v454_v56  ;;  %v563_v0 = vadd.f32 %v531_v59, %v455_v58 }
  0x9a   : > { %v592_v60 = vmax.f32 %v560_v54, 0.0  ;;  %v593_v61 = vmax.f32 %v561_v55, 0.0 }
  0x9b   : > { %v332_v63 = vpop.permute.xlu0 %331  ;;  %v594_v11 = vmax.f32 %v562_v62, 0.0  ;;  %v595_v12 = vmax.f32 %v563_v0, 0.0 }
  0x9c   : > { %v376_v4 = vmul.f32 %v1382_v33, %v332_v63  ;;  %v377_v5 = vmul.f32 %v1384_v34, %v332_v63  ;;  %v378_v6 = vmul.f32 %v1388_v38, %v332_v63  ;;  %v379_v7 = vmul.f32 %v1394_v41, %v332_v63  ;;  %v322_v8 = vpop.permute.xlu1 %321  ;;  %685 = vmatpush.msra.mxu0 %v592_v60 }
  0x9d   : > { %726 = vmatpush.msra.mxu1 %v593_v61  ;;  %767 = vmatpush.msra.mxu2 %v594_v11  ;;  %v368_v52 = vmul.f32 %v1382_v33, %v322_v8  ;;  %v369_v57 = vmul.f32 %v1384_v34, %v322_v8  ;;  %v370_v58 = vmul.f32 %v1388_v38, %v322_v8 }
  0x9e   : > { %v448_v13 = vadd.f32 %v417_v23, %v376_v4  ;;  %v449_v14 = vadd.f32 %v417_v23, %v377_v5  ;;  %v450_v16 = vadd.f32 %v417_v23, %v378_v6  ;;  %v451_v17 = vadd.f32 %v417_v23, %v379_v7  ;;  %808 = vmatpush.msra.mxu3 %v595_v12 }
  0x9f   : > { %v444_v23 = vadd.f32 %v1390_v39, %v372_v15  ;;  %v371_v59 = vmul.f32 %v1394_v41, %v322_v8  ;;  %v364_v15 = vmul.f32 %v1382_v33, %v1410_v3 }
  0xa0   : > { %v556_v19 = vadd.f32 %v524_v1, %v448_v13  ;;  %v557_v20 = vadd.f32 %v525_v2, %v449_v14  ;;  %v558_v25 = vadd.f32 %v526_v9, %v450_v16  ;;  %v559_v26 = vadd.f32 %v527_v10, %v451_v17  ;;  %v470_v1 = vpop.permute.xlu2 %469 }
  0xa1   : > { %v365_v16 = vmul.f32 %v1384_v34, %v1410_v3  ;;  %v366_v17 = vmul.f32 %v1388_v38, %v1410_v3  ;;  %v514_v21 = vmul.f32 %v1398_v46, %v470_v1  ;;  %v515_v24 = vmul.f32 %v1401_v48, %v470_v1 }
  0xa2   : > { %v588_v27 = vmax.f32 %v556_v19, 0.0  ;;  %v589_v28 = vmax.f32 %v557_v20, 0.0  ;;  %v590_v29 = vmax.f32 %v558_v25, 0.0  ;;  %v591_v30 = vmax.f32 %v559_v26, 0.0 }
  0xa3   : > { %v407_v53 = vpop.permute.xlu0 %406  ;;  %v512_v19 = vmul.f32 %v1386_v36, %v470_v1  ;;  %v513_v20 = vmul.f32 %v1392_v40, %v470_v1 }
  0xa4   : > { %686 = vmatpush.msra.mxu0 %v588_v27  ;;  %727 = vmatpush.msra.mxu1 %v589_v28  ;;  %v440_v60 = vadd.f32 %v407_v53, %v368_v52  ;;  %v441_v62 = vadd.f32 %v407_v53, %v369_v57  ;;  %v442_v63 = vadd.f32 %v407_v53, %v370_v58 }
  0xa5   : > { %768 = vmatpush.msra.mxu2 %v590_v29  ;;  %809 = vmatpush.msra.mxu3 %v591_v30  ;;  %v478_v31 = vpop.permute.xlu1 %477  ;;  %v443_v0 = vadd.f32 %v407_v53, %v371_v59 }
  0xa6   : > { %v520_v42 = vmul.f32 %v1386_v36, %v478_v31  ;;  %v521_v43 = vmul.f32 %v1392_v40, %v478_v31  ;;  %v522_v44 = vmul.f32 %v1398_v46, %v478_v31  ;;  %v523_v45 = vmul.f32 %v1401_v48, %v478_v31 }
  0xa8   : > { %v552_v47 = vadd.f32 %v520_v42, %v444_v23  ;;  %v553_v49 = vadd.f32 %v521_v43, %v445_v32  ;;  %v554_v50 = vadd.f32 %v522_v44, %v446_v35  ;;  %v555_v51 = vadd.f32 %v523_v45, %v447_v37  ;;  %v466_v23 = vpop.permute.xlu2 %465 }
  0xa9   : > { %v360_v37 = vmul.f32 %v1382_v33, %v1430_v22  ;;  %v509_v52 = vmul.f32 %v1392_v40, %v466_v23  ;;  %v510_v53 = vmul.f32 %v1398_v46, %v466_v23 }
  0xaa   : > { %v584_v54 = vmax.f32 %v552_v47, 0.0  ;;  %v585_v55 = vmax.f32 %v553_v49, 0.0  ;;  %v586_v39 = vmax.f32 %v554_v50, 0.0  ;;  %v587_v56 = vmax.f32 %v555_v51, 0.0 }
  0xab   : > { %v307_v30 = vpop.permute.xlu0 %306  ;;  %v361_v47 = vmul.f32 %v1384_v34, %v1430_v22  ;;  %v362_v49 = vmul.f32 %v1388_v38, %v1430_v22  ;;  %v363_v50 = vmul.f32 %v1394_v41, %v1430_v22  ;;  %v508_v51 = vmul.f32 %v1386_v36, %v466_v23 }
  0xac   : > { %687 = vmatpush.msra.mxu0 %v584_v54  ;;  %728 = vmatpush.msra.mxu1 %v585_v55  ;;  %v511_v54 = vmul.f32 %v1401_v48, %v466_v23 }
  0xad   : > { %769 = vmatpush.msra.mxu2 %v586_v39  ;;  %v474_v61 = vpop.permute.xlu1 %473  ;;  %810 = vmatpush.msra.mxu3 %v587_v56 }
  0xae   : > { %v516_v2 = vmul.f32 %v1386_v36, %v474_v61  ;;  %v517_v4 = vmul.f32 %v1392_v40, %v474_v61  ;;  %v518_v5 = vmul.f32 %v1398_v46, %v474_v61  ;;  %v519_v6 = vmul.f32 %v1401_v48, %v474_v61 }
  0xb0   : > { %v548_v7 = vadd.f32 %v516_v2, %v440_v60  ;;  %v549_v8 = vadd.f32 %v517_v4, %v441_v62  ;;  %v550_v9 = vadd.f32 %v518_v5, %v442_v63  ;;  %v551_v10 = vadd.f32 %v519_v6, %v443_v0  ;;  %v462_v63 = vpop.permute.xlu2 %461 }
  0xb1   : > { %v356_v5 = vmul.f32 %v1382_v33, %v307_v30  ;;  %v357_v6 = vmul.f32 %v1384_v34, %v307_v30 }
  0xb2   : > { %v580_v11 = vmax.f32 %v548_v7, 0.0  ;;  %v581_v12 = vmax.f32 %v549_v8, 0.0  ;;  %v582_v13 = vmax.f32 %v550_v9, 0.0  ;;  %v583_v14 = vmax.f32 %v551_v10, 0.0 }
  0xb3   : > { %v302_v62 = vpop.permute.xlu0 %301  ;;  %v358_v7 = vmul.f32 %v1388_v38, %v307_v30  ;;  %v359_v8 = vmul.f32 %v1394_v41, %v307_v30  ;;  %v504_v9 = vmul.f32 %v1386_v36, %v462_v63 }
  0xb4   : > { %688 = vmatpush.msra.mxu0 %v580_v11  ;;  %729 = vmatpush.msra.mxu1 %v581_v12  ;;  %v505_v11 = vmul.f32 %v1392_v40, %v462_v63  ;;  %v506_v12 = vmul.f32 %v1398_v46, %v462_v63  ;;  %v353_v30 = vmul.f32 %v1384_v34, %v302_v62 }
  0xb5   : > { %770 = vmatpush.msra.mxu2 %v582_v13  ;;  %811 = vmatpush.msra.mxu3 %v583_v14  ;;  %v507_v13 = vmul.f32 %v1401_v48, %v462_v63  ;;  %v354_v23 = vmul.f32 %v1388_v38, %v302_v62  ;;  %v609_v38 = vld [vmem:[%s1634_s4 + $0x28] sm:$0xff] }
  0xb6   : > { %v402_v25 = vpop.permute.xlu1 %401  ;;  %639 = vperm.xlu1 %1157, %v609_v38  }
  0xb7   : > { %v436_v26 = vadd.f32 %v402_v25, %v364_v15  ;;  %v437_v27 = vadd.f32 %v402_v25, %v365_v16  ;;  %v438_v28 = vadd.f32 %v402_v25, %v366_v17  ;;  %v439_v29 = vadd.f32 %v402_v25, %v367_v18 }
  0xb9   : > { %v544_v3 = vadd.f32 %v512_v19, %v436_v26  ;;  %v545_v31 = vadd.f32 %v513_v20, %v437_v27  ;;  %v546_v32 = vadd.f32 %v514_v21, %v438_v28  ;;  %v547_v35 = vadd.f32 %v515_v24, %v439_v29 }
  0xba   : > { %v352_v28 = vmul.f32 %v1382_v33, %v302_v62 }
  0xbb   : > { %v576_v42 = vmax.f32 %v544_v3, 0.0  ;;  %v577_v43 = vmax.f32 %v545_v31, 0.0  ;;  %v578_v44 = vmax.f32 %v546_v32, 0.0  ;;  %v579_v45 = vmax.f32 %v547_v35, 0.0  ;;  %v387_v29 = vpop.permute.xlu0 %386 }
  0xbc   : > { %v355_v3 = vmul.f32 %v1394_v41, %v302_v62  ;;  %v424_v32 = vadd.f32 %v387_v29, %v352_v28  ;;  %v425_v35 = vadd.f32 %v387_v29, %v353_v30 }
  0xbd   : > { %689 = vmatpush.msra.mxu0 %v576_v42  ;;  %730 = vmatpush.msra.mxu1 %v577_v43 }
  0xbe   : > { %771 = vmatpush.msra.mxu2 %v578_v44  ;;  %812 = vmatpush.msra.mxu3 %v579_v45  ;;  %v397_v55 = vpop.permute.xlu1 %396  ;;  %v427_v42 = vadd.f32 %v387_v29, %v355_v3 }
  0xbf   : > { %v432_v39 = vadd.f32 %v397_v55, %v360_v37  ;;  %v433_v56 = vadd.f32 %v397_v55, %v361_v47  ;;  %v434_v57 = vadd.f32 %v397_v55, %v362_v49  ;;  %v435_v58 = vadd.f32 %v397_v55, %v363_v50  ;;  %v598_v55 = vld [vmem:[%s1633_s3 + $0x10] sm:$0xff] }
  0xc0   : > { %v426_v37 = vadd.f32 %v387_v29, %v354_v23 }
  0xc1   : > { %v540_v59 = vadd.f32 %v508_v51, %v432_v39  ;;  %v541_v60 = vadd.f32 %v509_v52, %v433_v56  ;;  %v542_v22 = vadd.f32 %v510_v53, %v434_v57  ;;  %v543_v61 = vadd.f32 %v511_v54, %v435_v58  ;;  %v608_v54 = vld [vmem:[%s1634_s4 + $0x20] sm:$0xff]  ;;  %v605_v39 = vld [vmem:[%s1634_s4 + $0x8] sm:$0xff]  ;;  %v599_v56 = vld [vmem:[%s1633_s3 + $0x18] sm:$0xff] }
  0xc2   : > { %v874_v57 = vld [vmem:[#allocation2] sm:$0x1] }
  0xc3   : > { %v572_v0 = vmax.f32 %v540_v59, 0.0  ;;  %v573_v1 = vmax.f32 %v541_v60, 0.0  ;;  %v574_v2 = vmax.f32 %v542_v22, 0.0  ;;  %v575_v4 = vmax.f32 %v543_v61, 0.0  ;;  %v600_v58 = vld [vmem:[%s1633_s3 + $0x20] sm:$0xff]  ;;  %v601_v59 = vld [vmem:[%s1633_s3 + $0x28] sm:$0xff] }
  0xc4   : > { %v602_v60 = vld [vmem:[%s1633_s3 + $0x30] sm:$0xff]  ;;  %v603_v22 = vld [vmem:[%s1633_s3 + $0x38] sm:$0xff] }
  0xc5   : > { %690 = vmatpush.msra.mxu0 %v572_v0  ;;  %731 = vmatpush.msra.mxu1 %v573_v1 }
  0xc6   : > { %772 = vmatpush.msra.mxu2 %v574_v2  ;;  %813 = vmatpush.msra.mxu3 %v575_v4  ;;  %v392_v10 = vpop.permute.xlu1 %391 }
  0xc7   : > { %v428_v14 = vadd.f32 %v392_v10, %v356_v5  ;;  %v429_v15 = vadd.f32 %v392_v10, %v357_v6  ;;  %v430_v16 = vadd.f32 %v392_v10, %v358_v7  ;;  %v431_v17 = vadd.f32 %v392_v10, %v359_v8 }
  0xc9   : > { %v536_v18 = vadd.f32 %v504_v9, %v428_v14  ;;  %v537_v19 = vadd.f32 %v505_v11, %v429_v15  ;;  %v538_v20 = vadd.f32 %v506_v12, %v430_v16  ;;  %v539_v21 = vadd.f32 %v507_v13, %v431_v17 }
  0xcb   : > { %v568_v24 = vmax.f32 %v536_v18, 0.0  ;;  %v569_v25 = vmax.f32 %v537_v19, 0.0  ;;  %v570_v26 = vmax.f32 %v538_v20, 0.0  ;;  %v571_v27 = vmax.f32 %v539_v21, 0.0  ;;  %v645_v21 = vpop.permute.xlu0 %644 }
  0xcd   : > { %691 = vmatpush.msra.mxu0 %v568_v24  ;;  %732 = vmatpush.msra.mxu1 %v569_v25 }
  0xce   : > { %773 = vmatpush.msra.mxu2 %v570_v26  ;;  %814 = vmatpush.msra.mxu3 %v571_v27 }
  0xcf   : > { %v458_v31 = vpop.permute.xlu1 %457 }
  0xd0   : > { %v500_v43 = vmul.f32 %v1386_v36, %v458_v31  ;;  %v501_v33 = vmul.f32 %v1392_v40, %v458_v31  ;;  %v502_v44 = vmul.f32 %v1398_v46, %v458_v31  ;;  %v503_v34 = vmul.f32 %v1401_v48, %v458_v31  ;;  %v596_v36 = vld [vmem:[%s1633_s3] sm:$0xff]  ;;  %v611_v40 = vld [vmem:[%s1634_s4 + $0x38] sm:$0xff]  ;;  %v606_v46 = vld [vmem:[%s1634_s4 + $0x10] sm:$0xff] }
  0xd1   : > { %649 = vperm.xlu2 %1156, %v611_v40   ;;  %624 = vperm.xlu1 %1157, %v606_v46   ;;  %v597_v48 = vld [vmem:[%s1633_s3 + $0x8] sm:$0xff] }
  0xd2   : > { %v532_v41 = vadd.f32 %v500_v43, %v424_v32  ;;  %v533_v45 = vadd.f32 %v501_v33, %v425_v35  ;;  %v534_v47 = vadd.f32 %v502_v44, %v426_v37  ;;  %v535_v49 = vadd.f32 %v503_v34, %v427_v42 }
  0xd3   : > { %v630_v43 = vpop.permute.xlu0 %629 }
  0xd4   : > { %v564_v50 = vmax.f32 %v532_v41, 0.0  ;;  %v565_v51 = vmax.f32 %v533_v45, 0.0  ;;  %v566_v52 = vmax.f32 %v534_v47, 0.0  ;;  %v567_v53 = vmax.f32 %v535_v49, 0.0 }
  0xd6   : > { %692 = vmatpush.msra.mxu0 %v564_v50  ;;  %733 = vmatpush.msra.mxu1 %v565_v51 }
  0xd7   : > { %774 = vmatpush.msra.mxu2 %v566_v52  ;;  %815 = vmatpush.msra.mxu3 %v567_v53 }
  0xd8   : > { %1065 = vmatmul.msk.f32.vlgmr.msra.gmra.mxu0 %vm652_vm0, %v596_v36  ;;  %1073 = vmatmul.msk.f32.vlgmr.msra.gmra.mxu1 %vm652_vm0, %v596_v36 }
  0xd9   : > { %1081 = vmatmul.msk.f32.vlgmr.msra.gmra.mxu2 %vm652_vm0, %v596_v36  ;;  %1089 = vmatmul.msk.f32.vlgmr.msra.gmra.mxu3 %vm652_vm0, %v596_v36 }
  0xda   : > { %634 = vperm.xlu2 %1156, %v608_v54   ;;  %877 = vperm.xlu1 %1157, %v874_v57  }
  0xe0   : > { %1066 = vmatmul.msk.f32.gmra.mxu0 %vm652_vm0, %v597_v48  ;;  %1074 = vmatmul.msk.f32.gmra.mxu1 %vm652_vm0, %v597_v48 }
  0xe1   : > { %1082 = vmatmul.msk.f32.gmra.mxu2 %vm652_vm0, %v597_v48  ;;  %1090 = vmatmul.msk.f32.gmra.mxu3 %vm652_vm0, %v597_v48 }
  0xe2   : > { %619 = vperm.xlu2 %1156, %v605_v39  }
  0xe8   : > { %1067 = vmatmul.msk.f32.gmra.mxu0 %vm652_vm0, %v598_v55  ;;  %1075 = vmatmul.msk.f32.gmra.mxu1 %vm652_vm0, %v598_v55 }
  0xe9   : > { %1083 = vmatmul.msk.f32.gmra.mxu2 %vm652_vm0, %v598_v55  ;;  %1091 = vmatmul.msk.f32.gmra.mxu3 %vm652_vm0, %v598_v55 }
  0xf0   : > { %1068 = vmatmul.msk.f32.gmra.mxu0 %vm652_vm0, %v599_v56  ;;  %1076 = vmatmul.msk.f32.gmra.mxu1 %vm652_vm0, %v599_v56 }
  0xf1   : > { %1084 = vmatmul.msk.f32.gmra.mxu2 %vm652_vm0, %v599_v56  ;;  %1092 = vmatmul.msk.f32.gmra.mxu3 %vm652_vm0, %v599_v56 }
  0xf8   : > { %1069 = vmatmul.msk.f32.gmra.mxu0 %vm652_vm0, %v600_v58  ;;  %1077 = vmatmul.msk.f32.gmra.mxu1 %vm652_vm0, %v600_v58 }
  0xf9   : > { %1085 = vmatmul.msk.f32.gmra.mxu2 %vm652_vm0, %v600_v58  ;;  %1093 = vmatmul.msk.f32.gmra.mxu3 %vm652_vm0, %v600_v58 }
 0x100   : > { %1070 = vmatmul.msk.f32.gmra.mxu0 %vm652_vm0, %v601_v59  ;;  %1078 = vmatmul.msk.f32.gmra.mxu1 %vm652_vm0, %v601_v59 }
 0x101   : > { %1086 = vmatmul.msk.f32.gmra.mxu2 %vm652_vm0, %v601_v59  ;;  %1094 = vmatmul.msk.f32.gmra.mxu3 %vm652_vm0, %v601_v59 }
 0x108   : > { %1071 = vmatmul.msk.f32.gmra.mxu0 %vm652_vm0, %v602_v60  ;;  %1079 = vmatmul.msk.f32.gmra.mxu1 %vm652_vm0, %v602_v60 }
 0x109   : > { %1087 = vmatmul.msk.f32.gmra.mxu2 %vm652_vm0, %v602_v60  ;;  %1095 = vmatmul.msk.f32.gmra.mxu3 %vm652_vm0, %v602_v60 }
 0x110   : > { %1072 = vmatmul.msk.f32.gmra.mxu0 %vm652_vm0, %v603_v22  ;;  %1080 = vmatmul.msk.f32.gmra.mxu1 %vm652_vm0, %v603_v22 }
 0x111   : > { %1088 = vmatmul.msk.f32.gmra.mxu2 %vm652_vm0, %v603_v22  ;;  %1096 = vmatmul.msk.f32.gmra.mxu3 %vm652_vm0, %v603_v22 }
 0x128   : > { %v640_v29 = vpop.permute.xlu1 %639 }
 0x12b   : > { %v650_v20 = vpop.permute.xlu2 %649 }
 0x134   : > { %v635_v28 = vpop.permute.xlu2 %634 }
 0x13c   : > { %v620_v60 = vpop.permute.xlu2 %619 }
 0x143   : > { %v625_v46 = vpop.permute.xlu1 %624 }
 0x155   : > { %v1555_v61 = vpop.f32.mrf.mxu0  ;;  %v1557_v62 = vpop.f32.mrf.mxu1 }
 0x15c   : > { %v1559_v63 = vpop.f32.mrf.mxu2  ;;  %v1561_v0 = vpop.f32.mrf.mxu3 }
 0x15d   : > { %v1563_v1 = vpop.f32.mrf.mxu0  ;;  %v1565_v2 = vpop.f32.mrf.mxu1 }
 0x164   : > { %v1567_v4 = vpop.f32.mrf.mxu2  ;;  %v1569_v5 = vpop.f32.mrf.mxu3 }
 0x165   : > { %v700_v6 = vpop.f32.mrf.mxu0  ;;  %v741_v7 = vpop.f32.mrf.mxu1 }
 0x166   : > { %v701_v58 = vadd.f32 %v700_v6, %v625_v46  ;;  %v742_v59 = vadd.f32 %v741_v7, %v625_v46 }
 0x16c   : > { %v1571_v8 = vpop.f32.mrf.mxu2  ;;  %v1573_v9 = vpop.f32.mrf.mxu3 }
 0x16d   : > { %v703_v10 = vpop.f32.mrf.mxu0  ;;  %v744_v11 = vpop.f32.mrf.mxu1 }
 0x16e   : > { %v704_v50 = vadd.f32 %v703_v10, %v630_v43  ;;  %v745_v51 = vadd.f32 %v744_v11, %v630_v43 }
 0x174   : > { %v1575_v12 = vpop.f32.mrf.mxu2  ;;  %v1577_v13 = vpop.f32.mrf.mxu3 }
 0x175   : > { %v706_v14 = vpop.f32.mrf.mxu0  ;;  %v747_v15 = vpop.f32.mrf.mxu1 }
 0x176   : > { %v707_v41 = vadd.f32 %v706_v14, %v635_v28  ;;  %v748_v45 = vadd.f32 %v747_v15, %v635_v28  ;;  %v853_v15 = vmax.f32 %v704_v50, 0.0 }
 0x178   : > { %v857_v56 = vmax.f32 %v707_v41, 0.0  ;;  %v858_v57 = vmax.f32 %v748_v45, 0.0 }
 0x17c   : > { %v788_v16 = vpop.f32.mrf.mxu2  ;;  %v829_v17 = vpop.f32.mrf.mxu3 }
 0x17d   : > { %v709_v18 = vpop.f32.mrf.mxu0  ;;  %v750_v19 = vpop.f32.mrf.mxu1 }
 0x17e   : > { %v710_v33 = vadd.f32 %v709_v18, %v640_v29  ;;  %v751_v44 = vadd.f32 %v750_v19, %v640_v29  ;;  %v854_v18 = vmax.f32 %v745_v51, 0.0  ;;  %v698_v19 = vadd.f32 %v1563_v1, %v620_v60 }
 0x17f   : > { %v827_v1 = vadd.f32 %v1577_v13, %v630_v43  ;;  %v780_v13 = vadd.f32 %v1567_v4, %v620_v60  ;;  %v978_v51 = vlaneseq }
 0x180   : > { %v861_v52 = vmax.f32 %v710_v33, 0.0  ;;  %v862_v53 = vmax.f32 %v751_v44, 0.0 }
 0x181   : > { %v847_v4 = vmax.f32 %v780_v13, 0.0  ;;  %vm980_vm4 = vcmp.lt.s32.totalorder %v978_v51, 512 }
 0x184   : > { %v791_v24 = vpop.f32.mrf.mxu2  ;;  %v832_v25 = vpop.f32.mrf.mxu3 }
 0x185   : > { %v712_v26 = vpop.f32.mrf.mxu0  ;;  %v753_v27 = vpop.f32.mrf.mxu1  ;;  %v792_v22 = vadd.f32 %v791_v24, %v640_v29  ;;  %v833_v10 = vadd.f32 %v832_v25, %v640_v29  ;;  %v849_v24 = vmax.f32 %v701_v58, 0.0  ;;  %v850_v25 = vmax.f32 %v742_v59, 0.0 }
 0x186   : > { %v713_v32 = vadd.f32 %v712_v26, %v645_v21  ;;  %v754_v35 = vadd.f32 %v753_v27, %v645_v21  ;;  %v789_v26 = vadd.f32 %v788_v16, %v635_v28  ;;  %v830_v27 = vadd.f32 %v829_v17, %v635_v28 }
 0x187   : > { %v786_v29 = vadd.f32 %v1575_v12, %v630_v43  ;;  %v845_v16 = vmax.f32 %v698_v19, 0.0 }
 0x188   : > { %v865_v47 = vmax.f32 %v713_v32, 0.0  ;;  %v866_v49 = vmax.f32 %v754_v35, 0.0  ;;  %v859_v28 = vmax.f32 %v789_v26, 0.0  ;;  %v821_v35 = vadd.f32 %v1569_v5, %v620_v60 }
 0x18a   : > { %v848_v5 = vmax.f32 %v821_v35, 0.0 }
 0x18c   : > { %v794_v30 = vpop.f32.mrf.mxu2  ;;  %v835_v23 = vpop.f32.mrf.mxu3 }
 0x18d   : > { %v715_v3 = vpop.f32.mrf.mxu0  ;;  %v756_v31 = vpop.f32.mrf.mxu1  ;;  %v795_v48 = vadd.f32 %v794_v30, %v645_v21  ;;  %v836_v54 = vadd.f32 %v835_v23, %v645_v21  ;;  %v739_v21 = vadd.f32 %v1565_v2, %v620_v60  ;;  %v863_v2 = vmax.f32 %v792_v22, 0.0 }
 0x18e   : > { %v716_v37 = vadd.f32 %v715_v3, %v650_v20  ;;  %v757_v42 = vadd.f32 %v756_v31, %v650_v20  ;;  %v864_v3 = vmax.f32 %v833_v10, 0.0  ;;  %v860_v31 = vmax.f32 %v830_v27, 0.0 }
 0x18f   : > { %v867_v30 = vmax.f32 %v795_v48, 0.0  ;;  %v868_v23 = vmax.f32 %v836_v54, 0.0  ;;  %v846_v17 = vmax.f32 %v739_v21, 0.0 }
 0x190   : > { %v869_v34 = vmax.f32 %v716_v37, 0.0  ;;  %v870_v38 = vmax.f32 %v757_v42, 0.0  ;;  %v855_v37 = vmax.f32 %v786_v29, 0.0  ;;  %v856_v42 = vmax.f32 %v827_v1, 0.0 }
 0x192   : > { %892 = vmatpush.msrb.mxu0 %v869_v34  ;;  %912 = vmatpush.msrb.mxu1 %v870_v38 }
 0x194   : > { %v797_v36 = vpop.f32.mrf.mxu2  ;;  %v838_v40 = vpop.f32.mrf.mxu3  ;;  %893 = vmatpush.msrb.mxu0 %v865_v47  ;;  %913 = vmatpush.msrb.mxu1 %v866_v49 }
 0x195   : > { %v798_v55 = vadd.f32 %v797_v36, %v650_v20  ;;  %v839_v39 = vadd.f32 %v838_v40, %v650_v20  ;;  %v615_v20 = vpop.permute.xlu0 %614 }
 0x196   : > { %894 = vmatpush.msrb.mxu0 %v861_v52  ;;  %914 = vmatpush.msrb.mxu1 %v862_v53  ;;  %v695_v6 = vadd.f32 %v1555_v61, %v615_v20  ;;  %v736_v7 = vadd.f32 %v1557_v62, %v615_v20  ;;  %v783_v61 = vadd.f32 %v1571_v8, %v625_v46  ;;  %v873_v8 = vld [vmem:[%s1635_s5] sm:$0x1] }
 0x197   : > { %v871_v11 = vmax.f32 %v798_v55, 0.0  ;;  %v872_v14 = vmax.f32 %v839_v39, 0.0  ;;  %v824_v62 = vadd.f32 %v1573_v9, %v625_v46  ;;  %v777_v9 = vadd.f32 %v1559_v63, %v615_v20  ;;  %v878_v63 = vpop.permute.xlu1 %877 }
 0x198   : > { %895 = vmatpush.msrb.mxu0 %v857_v56  ;;  %915 = vmatpush.msrb.mxu1 %v858_v57  ;;  %v841_v32 = vmax.f32 %v695_v6, 0.0  ;;  %v842_v12 = vmax.f32 %v736_v7, 0.0  ;;  %v818_v43 = vadd.f32 %v1561_v0, %v615_v20  ;;  %v851_v33 = vmax.f32 %v783_v61, 0.0 }
 0x199   : > { %932 = vmatpush.msrb.mxu2 %v871_v11  ;;  %952 = vmatpush.msrb.mxu3 %v872_v14  ;;  %v852_v44 = vmax.f32 %v824_v62, 0.0  ;;  %v843_v34 = vmax.f32 %v777_v9, 0.0  ;;  %v880_v41 = vperm.slane %v878_v63, 0 }
 0x19a   : > { %896 = vmatpush.msrb.mxu0 %v853_v15  ;;  %916 = vmatpush.msrb.mxu1 %v854_v18  ;;  %v844_v38 = vmax.f32 %v818_v43, 0.0 }
 0x19b   : > { %933 = vmatpush.msrb.mxu2 %v867_v30  ;;  %953 = vmatpush.msrb.mxu3 %v868_v23 }
 0x19c   : > { %897 = vmatpush.msrb.mxu0 %v849_v24  ;;  %917 = vmatpush.msrb.mxu1 %v850_v25 }
 0x19d   : > { %934 = vmatpush.msrb.mxu2 %v863_v2  ;;  %954 = vmatpush.msrb.mxu3 %v864_v3 }
 0x19e   : > { %898 = vmatpush.msrb.mxu0 %v845_v16  ;;  %918 = vmatpush.msrb.mxu1 %v846_v17 }
 0x19f   : > { %935 = vmatpush.msrb.mxu2 %v859_v28  ;;  %955 = vmatpush.msrb.mxu3 %v860_v31 }
 0x1a0   : > { %899 = vmatpush.msrb.mxu0 %v841_v32  ;;  %919 = vmatpush.msrb.mxu1 %v842_v12 }
 0x1a1   : > { %936 = vmatpush.msrb.mxu2 %v855_v37  ;;  %956 = vmatpush.msrb.mxu3 %v856_v42 }
 0x1a2   : > { %1097 = vmatmul.msk.f32.vlgmr.msrb.gmra.mxu0 %vm652_vm0, %v873_v8  ;;  %1098 = vmatmul.msk.f32.vlgmr.msrb.gmra.mxu1 %vm652_vm0, %v873_v8 }
 0x1a3   : > { %937 = vmatpush.msrb.mxu2 %v851_v33  ;;  %957 = vmatpush.msrb.mxu3 %v852_v44 }
 0x1a5   : > { %938 = vmatpush.msrb.mxu2 %v847_v4  ;;  %958 = vmatpush.msrb.mxu3 %v848_v5 }
 0x1a7   : > { %939 = vmatpush.msrb.mxu2 %v843_v34  ;;  %959 = vmatpush.msrb.mxu3 %v844_v38 }
 0x1a8   : > { %1099 = vmatmul.msk.f32.vlgmr.msrb.gmra.mxu2 %vm652_vm0, %v873_v8  ;;  %1100 = vmatmul.msk.f32.vlgmr.msrb.gmra.mxu3 %vm652_vm0, %v873_v8 }
 0x21f   : > { %v921_v0 = vpop.f32.mrf.mxu1  ;;  %v901_v47 = vpop.f32.mrf.mxu0 }
 0x220   : > { %v922_v45 = vadd.f32 %v921_v0, %v880_v41  ;;  %v902_v40 = vadd.f32 %v901_v47, %v880_v41 }
 0x222   : > { %v968_v52 = vrot.slane %v922_v45, 7 }
 0x224   : > { %v972_v54 = vsel %vm971_vm1, %v902_v40, %v968_v52 }
 0x22b   : > { %v941_v49 = vpop.f32.mrf.mxu2  ;;  %v961_v50 = vpop.f32.mrf.mxu3 }
 0x22c   : > { %v942_v53 = vadd.f32 %v941_v49, %v880_v41  ;;  %v962_v36 = vadd.f32 %v961_v50, %v880_v41 }
 0x22e   : > { %v969_v46 = vrot.slane %v942_v53, 6  ;;  %v970_v48 = vrot.slane %v962_v36, 5 }
 0x230   : > { %v974_v55 = vsel %vm973_vm2, %v969_v46, %v970_v48 }
 0x231   : > { %v976_v39 = vsel %vm975_vm3, %v972_v54, %v974_v55 }
 0x232   : > { %982 = vst.msk [vmem:[%s274_s15] sm:$0xf] %vm980_vm4, %v976_v39 }
 0x233   : > { %1185 = shalt.err (!%p1182_p3)
}
 0x234   : > { %1105 = dma.vmem_to_hbm [thread:$0]  (%p1304_p5), %s997_s16, 64, %s999_s17, %s984_s22  }
 0x235 PF: > { %p1111_p4 = scmp.ge.s32.totalorder %s1220_s29, 2  ;;  %s1010_s30 = sand.u32 1, %s1208_s26  }
 0x236   : > { %s1011_s9 = scalar_lea.sflag [#allocation4], %s1010_s30 }
 0x237   : > { %p1108_p7 = pnand %p1111_p4, %p1308_p6 }
 0x239   : > { %p1109_p8 = pneg %p1108_p7 }
 0x23b   : > { %1203 = dma.done.wait (%p1109_p8), %s1011_s9, 64  }
 0x23c   : > { %1205 = vsyncadd (%p1109_p8), %s1011_s9, 4294967232  ;;  %p19_p9 = scmp.ge.s32.totalorder %s1290_s8, 4   ;;  %s1640_s26 = smov %s1212_s27 }
 0x23d   : > { %s1641_s27 = smov %s1216_s28  ;;  %s1642_s28 = smov %s1302_s11 }
 0x23e   : > { %s1643_s29 = smov %s1290_s8  ;;  %21 = sbr.rel (!%p19_p9) target bundleno = 6 (0x6), region = 83 }
 0x243   :  { %1017 = vsyncpa [#allocation4], 1 }
 0x244   :  { %1019 = vsyncpa [#allocation4 + $0x1], 1 }

</bundles_post_ra>
